<compile_context>
chip_gen: v7x
topology: tpu7x:2x2x1
jax: 0.10.0
libtpu: 0.0.40
codegen_flags: <defaults>
</compile_context>

<pallas_src>
import jax
import jax.numpy as jnp
from jax.experimental import pallas as pl
from jax.experimental.pallas import tpu as pltpu


# ----------------------------------------------------------------------------
# Fused kernel:
#   out[b]  = prompts[b % P]                        (the module's return value)
#   adapted = relu(x @ W1 + b1) @ W2 + b2           (dead compute, PyTorch parity)
# Weight DMAs (HBM->VMEM) are issued first and hidden under the prompt gather.
# ----------------------------------------------------------------------------
def fused_kernel(x_ref, w1_hbm, b1_ref, w2_hbm, b2_ref, prompts_ref,
                 adapted_ref, out_ref, w1_vmem, w2_vmem, sem):
    # --- start weight DMAs so the gather overlaps the big transfers ---
    cp1 = pltpu.make_async_copy(w1_hbm, w1_vmem, sem.at[0])
    cp2 = pltpu.make_async_copy(w2_hbm, w2_vmem, sem.at[1])
    cp1.start()
    cp2.start()

    # --- prompt gather: idx[b] = b % P is fully static -> one lane-dense store
    B = out_ref.shape[0]
    P = prompts_ref.shape[0]
    reps = -(-B // P)                                  # ceil(B / P), static
    tiled = jnp.tile(prompts_ref[...], (reps, 1, 1))   # (reps*P, L, D)
    out_ref[...] = tiled[:B]                           # static slice; no-op if B % P == 0

    # --- wait for weights, then run the adapter MLP (bf16 MXU, f32 accumulate)
    cp1.wait()
    cp2.wait()
    x = x_ref[...].astype(jnp.bfloat16)
    h = jnp.dot(x, w1_vmem[...], preferred_element_type=jnp.float32) + b1_ref[...]
    h = jnp.maximum(h, 0.0)
    y = jnp.dot(h.astype(jnp.bfloat16), w2_vmem[...],
                preferred_element_type=jnp.float32) + b2_ref[...]
    adapted_ref[...] = y.astype(adapted_ref.dtype)


def _fused_call(params, image_features):
    B, D = image_features.shape
    P, L, _ = params["prompt_ensemble"].shape
    adapted, prompts_out = pl.pallas_call(
        fused_kernel,
        out_shape=(
            jax.ShapeDtypeStruct((B, D), jnp.float32),
            jax.ShapeDtypeStruct((B, L, D), params["prompt_ensemble"].dtype),
        ),
        in_specs=[
            pl.BlockSpec((B, D), lambda: (0, 0)),          # image_features
            pl.BlockSpec(memory_space=pl.ANY),             # w1_t (manual DMA)
            pl.BlockSpec((1, D), lambda: (0, 0)),          # b1
            pl.BlockSpec(memory_space=pl.ANY),             # w2_t (manual DMA)
            pl.BlockSpec((1, D), lambda: (0, 0)),          # b2
            pl.BlockSpec((P, L, D), lambda: (0, 0, 0)),    # prompt_ensemble
        ],
        out_specs=(
            pl.BlockSpec((B, D), lambda: (0, 0)),
            pl.BlockSpec((B, L, D), lambda: (0, 0, 0)),
        ),
        scratch_shapes=[
            pltpu.VMEM((D, D), jnp.bfloat16),              # w1 VMEM buffer
            pltpu.VMEM((D, D), jnp.bfloat16),              # w2 VMEM buffer
            pltpu.SemaphoreType.DMA((2,)),                 # one sem per weight DMA
        ],
    )(
        image_features,
        params["w1_t"], params["b1"].reshape(1, D),
        params["w2_t"], params["b2"].reshape(1, D),
        params["prompt_ensemble"],
    )
    return adapted, prompts_out


def maple_prompt_learner_forward(params, image_features):
    """Mirrors MaPLePromptLearner.forward: the adapter MLP runs (fused into the
    same launch so it is not DCE'd) but only the gathered prompts are returned."""
    _, prompts_out = _fused_call(params, image_features)
    return prompts_out


def init_params(key, ctx_len=8, embed_dim=512, num_prompts=4):
    k0, k1, k2, k3, k4 = jax.random.split(key, 5)
    bound = 1.0 / jnp.sqrt(embed_dim)
    return {
        # nn.Parameter(torch.randn(num_prompts, ctx_len, embed_dim))
        "prompt_ensemble": jax.random.normal(
            k0, (num_prompts, ctx_len, embed_dim), jnp.float32),
        # nn.Linear(D, D) weights stored pre-transposed (in, out) for x @ W,
        # kept in bf16 to halve HBM traffic (the forward discards the adapter
        # output, so bf16 weight precision is inconsequential).
        "w1_t": jax.random.uniform(k1, (embed_dim, embed_dim), jnp.float32,
                                   -bound, bound).astype(jnp.bfloat16),
        "b1": jax.random.uniform(k2, (embed_dim,), jnp.float32, -bound, bound),
        "w2_t": jax.random.uniform(k3, (embed_dim, embed_dim), jnp.float32,
                                   -bound, bound).astype(jnp.bfloat16),
        "b2": jax.random.uniform(k4, (embed_dim,), jnp.float32, -bound, bound),
    }


if __name__ == "__main__":
    key = jax.random.PRNGKey(0)
    pkey, xkey = jax.random.split(key)

    # Module defaults: ctx_len=8, embed_dim=512, num_prompts=4; small batch.
    B, ctx_len, embed_dim, num_prompts = 8, 8, 512, 4
    params = init_params(pkey, ctx_len=ctx_len, embed_dim=embed_dim,
                         num_prompts=num_prompts)
    image_features = jax.random.normal(xkey, (B, embed_dim), jnp.float32)

    # Forward (jitted): single fused pallas_call.
    out = jax.jit(maple_prompt_learner_forward)(params, image_features)
    out = jax.block_until_ready(out)

    # --- reference checks (pure JAX) ---
    # gather (exact copy)
    idx_ref = jnp.arange(B) % num_prompts
    ref_prompts = params["prompt_ensemble"][idx_ref]
    assert out.shape == (B, ctx_len, embed_dim), out.shape
    assert jnp.allclose(out, ref_prompts), "mismatch vs reference gather"

    # adapter (bf16 weights, f32 accumulation) — checked via the fused call
    adapted, _ = jax.block_until_ready(_fused_call(params, image_features))
    h_ref = jnp.maximum(
        jnp.dot(image_features.astype(jnp.bfloat16), params["w1_t"],
                preferred_element_type=jnp.float32) + params["b1"], 0.0)
    adapted_ref = jnp.dot(h_ref.astype(jnp.bfloat16), params["w2_t"],
                          preferred_element_type=jnp.float32) + params["b2"]
    assert jnp.allclose(adapted, adapted_ref, rtol=5e-2, atol=5e-2), \
        "adapter mismatch vs reference MLP"

    print("KERNEL_OK")
</pallas_src>

<mosaic_0001>
module attributes {stable_mosaic.version = 11 : i64} {
  func.func @fused_kernel(%arg0: memref<8x512xf32, #tpu.memory_space<vmem>>, %arg1: memref<512x512xbf16, #tpu.memory_space<any>>, %arg2: memref<1x512xf32, #tpu.memory_space<vmem>>, %arg3: memref<512x512xbf16, #tpu.memory_space<any>>, %arg4: memref<1x512xf32, #tpu.memory_space<vmem>>, %arg5: memref<4x8x512xf32, #tpu.memory_space<vmem>>, %arg6: memref<8x512xf32, #tpu.memory_space<vmem>>, %arg7: memref<8x8x512xf32, #tpu.memory_space<vmem>>, %arg8: memref<512x512xbf16, #tpu.memory_space<vmem>>, %arg9: memref<512x512xbf16, #tpu.memory_space<vmem>>, %arg10: memref<2x!tpu.dma_semaphore, #tpu.memory_space<semaphore_mem>>) attributes {dimension_semantics = [], scalar_prefetch = 0 : i64, scratch_operands = 3 : i64, tpu.core_type = #tpu.core_type<tc>} {
    %c0_i32 = arith.constant 0 : i32
    %0 = tpu.memref_slice %arg10[%c0_i32] : memref<2x!tpu.dma_semaphore, #tpu.memory_space<semaphore_mem>> -> memref<1x!tpu.dma_semaphore, #tpu.memory_space<semaphore_mem>>
    %1 = tpu.memref_squeeze %0 : memref<1x!tpu.dma_semaphore, #tpu.memory_space<semaphore_mem>> -> memref<!tpu.dma_semaphore, #tpu.memory_space<semaphore_mem>>
    tpu.enqueue_dma source(%arg1 : memref<512x512xbf16, #tpu.memory_space<any>>) target(%arg8 : memref<512x512xbf16, #tpu.memory_space<vmem>>) target_semaphore(%1 : memref<!tpu.dma_semaphore, #tpu.memory_space<semaphore_mem>>)
    %c1_i32 = arith.constant 1 : i32
    %2 = tpu.memref_slice %arg10[%c1_i32] : memref<2x!tpu.dma_semaphore, #tpu.memory_space<semaphore_mem>> -> memref<1x!tpu.dma_semaphore, #tpu.memory_space<semaphore_mem>>
    %3 = tpu.memref_squeeze %2 : memref<1x!tpu.dma_semaphore, #tpu.memory_space<semaphore_mem>> -> memref<!tpu.dma_semaphore, #tpu.memory_space<semaphore_mem>>
    tpu.enqueue_dma source(%arg3 : memref<512x512xbf16, #tpu.memory_space<any>>) target(%arg9 : memref<512x512xbf16, #tpu.memory_space<vmem>>) target_semaphore(%3 : memref<!tpu.dma_semaphore, #tpu.memory_space<semaphore_mem>>)
    %c0 = arith.constant 0 : index
    %c0_0 = arith.constant 0 : index
    %c0_1 = arith.constant 0 : index
    %4 = vector.load %arg5[%c0, %c0_0, %c0_1] : memref<4x8x512xf32, #tpu.memory_space<vmem>>, vector<4x8x512xf32>
    %5 = tpu.concatenate %4, %4 in 0 : vector<4x8x512xf32>, vector<4x8x512xf32> -> vector<8x8x512xf32>
    %c0_2 = arith.constant 0 : index
    %c0_3 = arith.constant 0 : index
    %c0_4 = arith.constant 0 : index
    %6 = vector.load %arg7[%c0_2, %c0_3, %c0_4] : memref<8x8x512xf32, #tpu.memory_space<vmem>>, vector<8x8x512xf32>
    tpu.vector_store %arg7[%c0_2, %c0_3, %c0_4], %5 {strides = array<i32>} : memref<8x8x512xf32, #tpu.memory_space<vmem>>, vector<8x8x512xf32>,
    %c0_i32_5 = arith.constant 0 : i32
    %7 = tpu.memref_slice %arg10[%c0_i32_5] : memref<2x!tpu.dma_semaphore, #tpu.memory_space<semaphore_mem>> -> memref<1x!tpu.dma_semaphore, #tpu.memory_space<semaphore_mem>>
    %8 = tpu.memref_squeeze %7 : memref<1x!tpu.dma_semaphore, #tpu.memory_space<semaphore_mem>> -> memref<!tpu.dma_semaphore, #tpu.memory_space<semaphore_mem>>
    tpu.wait_dma2 semaphore(%8 : memref<!tpu.dma_semaphore, #tpu.memory_space<semaphore_mem>>) src(%arg1 : memref<512x512xbf16, #tpu.memory_space<any>>) dst(%arg8 : memref<512x512xbf16, #tpu.memory_space<vmem>>)
    %c1_i32_6 = arith.constant 1 : i32
    %9 = tpu.memref_slice %arg10[%c1_i32_6] : memref<2x!tpu.dma_semaphore, #tpu.memory_space<semaphore_mem>> -> memref<1x!tpu.dma_semaphore, #tpu.memory_space<semaphore_mem>>
    %10 = tpu.memref_squeeze %9 : memref<1x!tpu.dma_semaphore, #tpu.memory_space<semaphore_mem>> -> memref<!tpu.dma_semaphore, #tpu.memory_space<semaphore_mem>>
    tpu.wait_dma2 semaphore(%10 : memref<!tpu.dma_semaphore, #tpu.memory_space<semaphore_mem>>) src(%arg3 : memref<512x512xbf16, #tpu.memory_space<any>>) dst(%arg9 : memref<512x512xbf16, #tpu.memory_space<vmem>>)
    %c0_7 = arith.constant 0 : index
    %c0_8 = arith.constant 0 : index
    %11 = vector.load %arg0[%c0_7, %c0_8] : memref<8x512xf32, #tpu.memory_space<vmem>>, vector<8x512xf32>
    %12 = arith.truncf %11 : vector<8x512xf32> to vector<8x512xbf16>
    %c0_9 = arith.constant 0 : index
    %c0_10 = arith.constant 0 : index
    %13 = vector.load %arg8[%c0_9, %c0_10] : memref<512x512xbf16, #tpu.memory_space<vmem>>, vector<512x512xbf16>
    %cst = arith.constant dense<0.000000e+00> : vector<8x512xf32>
    %14 = tpu.matmul %12, %13, %cst {dimension_numbers = #tpu.dot_dimension_numbers<[1], [0], [0], [1], [0, 0, 1, 1], [], []>} : vector<8x512xbf16>, vector<512x512xbf16>, vector<8x512xf32> -> vector<8x512xf32>
    %c0_11 = arith.constant 0 : index
    %c0_12 = arith.constant 0 : index
    %15 = vector.load %arg2[%c0_11, %c0_12] : memref<1x512xf32, #tpu.memory_space<vmem>>, vector<1x512xf32>
    %16 = vector.broadcast %15 : vector<1x512xf32> to vector<8x512xf32>
    %17 = arith.addf %14, %16 : vector<8x512xf32>
    %cst_13 = arith.constant 0.000000e+00 : f32
    %18 = vector.broadcast %cst_13 : f32 to vector<8x512xf32>
    %19 = arith.maximumf %17, %18 : vector<8x512xf32>
    %20 = arith.truncf %19 : vector<8x512xf32> to vector<8x512xbf16>
    %c0_14 = arith.constant 0 : index
    %c0_15 = arith.constant 0 : index
    %21 = vector.load %arg9[%c0_14, %c0_15] : memref<512x512xbf16, #tpu.memory_space<vmem>>, vector<512x512xbf16>
    %cst_16 = arith.constant dense<0.000000e+00> : vector<8x512xf32>
    %22 = tpu.matmul %20, %21, %cst_16 {dimension_numbers = #tpu.dot_dimension_numbers<[1], [0], [0], [1], [0, 0, 1, 1], [], []>} : vector<8x512xbf16>, vector<512x512xbf16>, vector<8x512xf32> -> vector<8x512xf32>
    %c0_17 = arith.constant 0 : index
    %c0_18 = arith.constant 0 : index
    %23 = vector.load %arg4[%c0_17, %c0_18] : memref<1x512xf32, #tpu.memory_space<vmem>>, vector<1x512xf32>
    %24 = vector.broadcast %23 : vector<1x512xf32> to vector<8x512xf32>
    %25 = arith.addf %22, %24 : vector<8x512xf32>
    %c0_19 = arith.constant 0 : index
    %c0_20 = arith.constant 0 : index
    %26 = vector.load %arg6[%c0_19, %c0_20] : memref<8x512xf32, #tpu.memory_space<vmem>>, vector<8x512xf32>
    tpu.vector_store %arg6[%c0_19, %c0_20], %25 {strides = array<i32>} : memref<8x512xf32, #tpu.memory_space<vmem>>, vector<8x512xf32>,
    return
  }
}

</mosaic_0001>

<bundles_post_ra>
// kernel: maple_prompt_learner_forward.1
= control target key start
LH: loop header
LB: loop body
LE: loop exit
PB: predicated region body
PF: predicated region fallthrough
CT: control target
= control target key end

     0   :  { %13 = vsyncpa [#allocation6], 0  ;;  %s1174_s0 = inlined_call_operand.hbm [shape: f32[8,512], index: 0, kind: input, shape index: {}]   ;;  %s1175_s1 = inlined_call_operand.hbm [shape: bf16[512,512], index: 1, kind: input, shape index: {}]   ;;  %s1176_s2 = inlined_call_operand.vmem [shape: f32[1,512], index: 2, kind: input, shape index: {}]   ;;  %s1177_s3 = inlined_call_operand.hbm [shape: bf16[512,512], index: 3, kind: input, shape index: {}]   ;;  %s1178_s4 = inlined_call_operand.vmem [shape: f32[1,512], index: 4, kind: input, shape index: {}]   ;;  %s1179_s5 = inlined_call_operand.hbm [shape: f32[4,8,512], index: 5, kind: input, shape index: {}]   ;;  %s1180_s6 = inlined_call_operand.hbm [shape: f32[8,512], index: 6, kind: output, shape index: {0}]   ;;  %s1181_s7 = inlined_call_operand.hbm [shape: f32[8,8,512], index: 7, kind: output, shape index: {1}]  }
   0x1   :  { %14 = vsyncpa [#allocation9], 0 }
   0x2   :  { %15 = vsyncpa [#allocation7], 0 }
   0x3   :  { %16 = vsyncpa [#allocation12], 0  ;;  %s1013_s24 = smov [#allocation5]   ;;  %s1014_s26 = smov [#allocation8]  }
   0x4   :  { %s23_s25 = sshll.u32 %s1013_s24, 4  ;;  %s36_s27 = sshll.u32 %s1014_s26, 4  ;;  %s24_s25 = int_to_ptr.vmem [resolvable:$true] %s23_s25  ;;  %s1070_s27 = int_to_ptr.vmem [resolvable:$true] %s36_s27 }
   0x5   :  { %s913_s30 = scalar_lea.hbm %s1174_s0, 512 }
   0x6   :  { %p914_p0 = scmp.ne.s32.totalorder %s1174_s0, %s913_s30  ;;  %p917_p1 = scmp.lt.u32.totalorder %s913_s30, %s1174_s0 }
   0x8   :  { %p919_p2 = pnand %p917_p1, %p914_p0 }
   0xa   :  { %922 = shalt.err (!%p919_p2)
}
   0xb   :  { %s923_s12 = scalar_lea.vmem %s24_s25, 512  ;;  %p928_p4 = scmp.lt.s32.totalorder %s24_s25, %s24_s25 }
   0xc   :  { %p924_p3 = scmp.ne.s32.totalorder %s24_s25, %s923_s12  ;;  %p929_p5 = scmp.lt.s32.totalorder %s923_s12, %s923_s12 }
   0xe   :  { %p930_p6 = por %p929_p5, %p928_p4 }
  0x10   :  { %p931_p7 = pnand %p930_p6, %p924_p3 }
  0x12   :  { %934 = shalt.err (!%p931_p7)
}
  0x13   :  { %26 = dma.hbm_to_vmem [thread:$0]  %s1174_s0, 512, %s24_s25, [#allocation6]  }
  0x14   :  { %s935_s17 = scalar_lea.hbm %s1179_s5, 2048 }
  0x15   :  { %p936_p8 = scmp.ne.s32.totalorder %s1179_s5, %s935_s17  ;;  %p939_p9 = scmp.lt.u32.totalorder %s935_s17, %s1179_s5 }
  0x17   :  { %p941_p10 = pnand %p939_p9, %p936_p8 }
  0x19   :  { %944 = shalt.err (!%p941_p10)
}
  0x1a   :  { %s945_s22 = scalar_lea.vmem %s1070_s27, 2048  ;;  %p950_p12 = scmp.lt.s32.totalorder %s1070_s27, %s1070_s27 }
  0x1b   :  { %p946_p11 = scmp.ne.s32.totalorder %s1070_s27, %s945_s22  ;;  %p951_p13 = scmp.lt.s32.totalorder %s945_s22, %s945_s22 }
  0x1d   :  { %p952_p0 = por %p951_p13, %p950_p12 }
  0x1f   :  { %p953_p1 = pnand %p952_p0, %p946_p11 }
  0x21   :  { %956 = shalt.err (!%p953_p1)
}
  0x22   :  { %s1015_s0 = smov 512   ;;  %s1016_s23 = smov 32  }
  0x23   :  { %42 = dma.hbm_to_vmem [thread:$0]  %s1179_s5, 2048, %s1070_s27, [#allocation9], %s1015_s0, %s1015_s0, %s1016_s23  }
  0x24   :  { %1001 = dma.done.wait [#allocation6], 512  }
  0x25   :  { %1002 = vsyncadd [#allocation6], 4294966784 }
  0x26   :  { %1003 = dma.done.wait [#allocation9], 2048  }
  0x27   :  { %1004 = vsyncadd [#allocation9], 4294965248  ;;  %s53_s26 = sld [smem:[#allocation0]]   ;;  %65 = sst [smem:[#allocation14]] %s1015_s0 }
  0x28   :  { %67 = sst [smem:[#allocation14 + $0x1]] %s1015_s0  ;;  %s1017_s28 = smov [#allocation2]  }
  0x29   :  { %s61_s29 = sshll.u32 %s1017_s28, 4  ;;  %s1018_s30 = smov 4   ;;  %s62_s29 = int_to_ptr.vmem [resolvable:$true] %s61_s29 }
  0x2a   :  { %69 = sst [smem:[#allocation14 + $0x2]] %s1018_s30  ;;  %s1019_s8 = smov 64  }
  0x2b   :  { %71 = sst [smem:[#allocation14 + $0x3]] %s1019_s8  ;;  %s1020_s9 = smov 128  }
  0x2c   :  { %73 = sst [smem:[#allocation14 + $0x4]] %s1020_s9  ;;  %s1021_s5 = smov 2  }
  0x2d   :  { %s866_s10 = sshll.u32 %s53_s26, 26  ;;  %75 = sst [smem:[#allocation14 + $0x5]] %s1021_s5 }
  0x2e   :  { %s867_s27 = sadd.s32 134217728, %s866_s10  ;;  %s1022_s11 = smov 256  }
  0x2f   :  { %77 = sst [smem:[#allocation14 + $0x6]] %s1022_s11  ;;  %s1023_s12 = smov [#allocation4]  }
  0x30   :  { %79 = sst [smem:[#allocation14 + $0x7]] %s1019_s8  ;;  %s1024_s13 = smov [#allocation13]  }
  0x31   :  { %81 = sst [smem:[#allocation14 + $0x8]] %s1018_s30  ;;  %s1025_s16 = smov [#allocation3]  }
  0x32   :  { %83 = dma.general %s1175_s1, 16384, %s62_s29, %s1023_s12, %s1024_s13, [#allocation14], %s867_s27, 0  }
  0x33   :  { %100 = sst [smem:[#allocation16]] %s1015_s0  ;;  %s96_s17 = sshll.u32 %s1025_s16, 4  ;;  %s97_s17 = int_to_ptr.vmem [resolvable:$true] %s96_s17 }
  0x34   :  { %102 = sst [smem:[#allocation16 + $0x1]] %s1015_s0  ;;  %s1026_s18 = smov [#allocation4 + $0x1]  }
  0x35   :  { %104 = sst [smem:[#allocation16 + $0x2]] %s1018_s30  ;;  %s1027_s19 = smov [#allocation15]  }
  0x36   :  { %106 = sst [smem:[#allocation16 + $0x3]] %s1019_s8 }
  0x37   :  { %108 = sst [smem:[#allocation16 + $0x4]] %s1020_s9 }
  0x38   :  { %110 = sst [smem:[#allocation16 + $0x5]] %s1021_s5 }
  0x39   :  { %112 = sst [smem:[#allocation16 + $0x6]] %s1022_s11 }
  0x3a   :  { %114 = sst [smem:[#allocation16 + $0x7]] %s1019_s8 }
  0x3b   :  { %116 = sst [smem:[#allocation16 + $0x8]] %s1018_s30 }
  0x3c   :  { %118 = dma.general %s1177_s3, 16384, %s97_s17, %s1026_s18, %s1027_s19, [#allocation16], %s867_s27, 0  }
  0x3d   :  { %v119_v0 = vld [vmem:[#allocation8] sm:$0xff]  ;;  %v120_v1 = vld [vmem:[#allocation8 + $0x8] sm:$0xff]  ;;  %v121_v2 = vld [vmem:[#allocation8 + $0x10] sm:$0xff] }
  0x3e   :  { %135 = vst [vmem:[#allocation11] sm:$0xff] %v119_v0  ;;  %151 = vst [vmem:[#allocation11 + $0x80] sm:$0xff] %v119_v0  ;;  %v122_v3 = vld [vmem:[#allocation8 + $0x18] sm:$0xff]  ;;  %v123_v4 = vld [vmem:[#allocation8 + $0x20] sm:$0xff] }
  0x3f   :  { %136 = vst [vmem:[#allocation11 + $0x8] sm:$0xff] %v120_v1  ;;  %152 = vst [vmem:[#allocation11 + $0x88] sm:$0xff] %v120_v1  ;;  %v124_v5 = vld [vmem:[#allocation8 + $0x28] sm:$0xff]  ;;  %v125_v6 = vld [vmem:[#allocation8 + $0x30] sm:$0xff] }
  0x40   :  { %137 = vst [vmem:[#allocation11 + $0x10] sm:$0xff] %v121_v2  ;;  %153 = vst [vmem:[#allocation11 + $0x90] sm:$0xff] %v121_v2  ;;  %v126_v7 = vld [vmem:[#allocation8 + $0x38] sm:$0xff]  ;;  %v127_v8 = vld [vmem:[#allocation8 + $0x40] sm:$0xff] }
  0x41   :  { %138 = vst [vmem:[#allocation11 + $0x18] sm:$0xff] %v122_v3  ;;  %154 = vst [vmem:[#allocation11 + $0x98] sm:$0xff] %v122_v3  ;;  %v128_v9 = vld [vmem:[#allocation8 + $0x48] sm:$0xff]  ;;  %v129_v10 = vld [vmem:[#allocation8 + $0x50] sm:$0xff] }
  0x42   :  { %139 = vst [vmem:[#allocation11 + $0x20] sm:$0xff] %v123_v4  ;;  %155 = vst [vmem:[#allocation11 + $0xa0] sm:$0xff] %v123_v4  ;;  %v130_v11 = vld [vmem:[#allocation8 + $0x58] sm:$0xff]  ;;  %v131_v12 = vld [vmem:[#allocation8 + $0x60] sm:$0xff] }
  0x43   :  { %140 = vst [vmem:[#allocation11 + $0x28] sm:$0xff] %v124_v5  ;;  %156 = vst [vmem:[#allocation11 + $0xa8] sm:$0xff] %v124_v5  ;;  %v132_v13 = vld [vmem:[#allocation8 + $0x68] sm:$0xff]  ;;  %v133_v14 = vld [vmem:[#allocation8 + $0x70] sm:$0xff] }
  0x44   :  { %141 = vst [vmem:[#allocation11 + $0x30] sm:$0xff] %v125_v6  ;;  %157 = vst [vmem:[#allocation11 + $0xb0] sm:$0xff] %v125_v6  ;;  %v134_v15 = vld [vmem:[#allocation8 + $0x78] sm:$0xff] }
  0x45   :  { %142 = vst [vmem:[#allocation11 + $0x38] sm:$0xff] %v126_v7  ;;  %158 = vst [vmem:[#allocation11 + $0xb8] sm:$0xff] %v126_v7 }
  0x46   :  { %143 = vst [vmem:[#allocation11 + $0x40] sm:$0xff] %v127_v8  ;;  %159 = vst [vmem:[#allocation11 + $0xc0] sm:$0xff] %v127_v8 }
  0x47   :  { %144 = vst [vmem:[#allocation11 + $0x48] sm:$0xff] %v128_v9  ;;  %160 = vst [vmem:[#allocation11 + $0xc8] sm:$0xff] %v128_v9 }
  0x48   :  { %145 = vst [vmem:[#allocation11 + $0x50] sm:$0xff] %v129_v10  ;;  %161 = vst [vmem:[#allocation11 + $0xd0] sm:$0xff] %v129_v10 }
  0x49   :  { %146 = vst [vmem:[#allocation11 + $0x58] sm:$0xff] %v130_v11  ;;  %162 = vst [vmem:[#allocation11 + $0xd8] sm:$0xff] %v130_v11 }
  0x4a   :  { %147 = vst [vmem:[#allocation11 + $0x60] sm:$0xff] %v131_v12  ;;  %163 = vst [vmem:[#allocation11 + $0xe0] sm:$0xff] %v131_v12 }
  0x4b   :  { %148 = vst [vmem:[#allocation11 + $0x68] sm:$0xff] %v132_v13  ;;  %164 = vst [vmem:[#allocation11 + $0xe8] sm:$0xff] %v132_v13 }
  0x4c   :  { %149 = vst [vmem:[#allocation11 + $0x70] sm:$0xff] %v133_v14  ;;  %165 = vst [vmem:[#allocation11 + $0xf0] sm:$0xff] %v133_v14 }
  0x4d   :  { %150 = vst [vmem:[#allocation11 + $0x78] sm:$0xff] %v134_v15  ;;  %166 = vst [vmem:[#allocation11 + $0xf8] sm:$0xff] %v134_v15 }
  0x4e   :  { %1005 = dma.done.wait [#allocation4], 16384 }
  0x4f   :  { %1006 = vsyncadd [#allocation4], 4294950912 }
  0x50   :  { %1007 = dma.done.wait [#allocation4 + $0x1], 16384 }
  0x51   :  { %1008 = vsyncadd [#allocation4 + $0x1], 4294950912  ;;  %v182_v16 = vld [vmem:[#allocation2 + $0x8] sm:$0xff]  ;;  %v184_v17 = vld [vmem:[#allocation2 + $0x18] sm:$0xff] }
  0x52   :  { %v181_v18 = vld [vmem:[#allocation2] sm:$0xff]  ;;  %331 = vmatprep.subr.bf16.mxu0 %v182_v16  ;;  %413 = vmatprep.subr.bf16.mxu1 %v184_v17  ;;  %v183_v19 = vld [vmem:[#allocation2 + $0x10] sm:$0xff]  ;;  %v186_v20 = vld [vmem:[#allocation2 + $0x28] sm:$0xff] }
  0x53   :  { %v188_v21 = vld [vmem:[#allocation2 + $0x38] sm:$0xff]  ;;  %332 = vmatpush1.bf16.msra.mxu0 %v181_v18  ;;  %414 = vmatpush1.bf16.msra.mxu1 %v183_v19  ;;  %v185_v22 = vld [vmem:[#allocation2 + $0x20] sm:$0xff]  ;;  %v187_v23 = vld [vmem:[#allocation2 + $0x30] sm:$0xff] }
  0x54   :  { %333 = vmatprep.subr.bf16.mxu0 %v186_v20  ;;  %415 = vmatprep.subr.bf16.mxu1 %v188_v21  ;;  %v190_v24 = vld [vmem:[#allocation2 + $0x48] sm:$0xff]  ;;  %v192_v25 = vld [vmem:[#allocation2 + $0x58] sm:$0xff]  ;;  %v189_v26 = vld [vmem:[#allocation2 + $0x40] sm:$0xff] }
  0x55   :  { %v191_v27 = vld [vmem:[#allocation2 + $0x50] sm:$0xff]  ;;  %v194_v28 = vld [vmem:[#allocation2 + $0x68] sm:$0xff]  ;;  %v196_v29 = vld [vmem:[#allocation2 + $0x78] sm:$0xff] }
  0x56   :  { %v193_v30 = vld [vmem:[#allocation2 + $0x60] sm:$0xff]  ;;  %v195_v31 = vld [vmem:[#allocation2 + $0x70] sm:$0xff]  ;;  %v198_v32 = vld [vmem:[#allocation2 + $0x88] sm:$0xff] }
  0x57   :  { %334 = vmatpush1.bf16.msra.mxu0 %v185_v22  ;;  %416 = vmatpush1.bf16.msra.mxu1 %v187_v23  ;;  %v200_v33 = vld [vmem:[#allocation2 + $0x98] sm:$0xff]  ;;  %v197_v34 = vld [vmem:[#allocation2 + $0x80] sm:$0xff]  ;;  %v199_v35 = vld [vmem:[#allocation2 + $0x90] sm:$0xff] }
  0x58   :  { %335 = vmatprep.subr.bf16.mxu0 %v190_v24  ;;  %417 = vmatprep.subr.bf16.mxu1 %v192_v25  ;;  %v202_v36 = vld [vmem:[#allocation2 + $0xa8] sm:$0xff]  ;;  %v204_v37 = vld [vmem:[#allocation2 + $0xb8] sm:$0xff]  ;;  %v201_v38 = vld [vmem:[#allocation2 + $0xa0] sm:$0xff] }
  0x59   :  { %v203_v39 = vld [vmem:[#allocation2 + $0xb0] sm:$0xff]  ;;  %v206_v40 = vld [vmem:[#allocation2 + $0xc8] sm:$0xff]  ;;  %v208_v41 = vld [vmem:[#allocation2 + $0xd8] sm:$0xff] }
  0x5a   :  { %v174_v42 = vld [vmem:[#allocation5 + $0x8] sm:$0xff]  ;;  %v205_v44 = vld [vmem:[#allocation2 + $0xc0] sm:$0xff]  ;;  %v207_v45 = vld [vmem:[#allocation2 + $0xd0] sm:$0xff] }
  0x5b   :  { %336 = vmatpush1.bf16.msra.mxu0 %v189_v26  ;;  %418 = vmatpush1.bf16.msra.mxu1 %v191_v27  ;;  %v178_v43 = vpack.c.bf16 %v174_v42, %v174_v42  ;;  %v210_v46 = vld [vmem:[#allocation2 + $0xe8] sm:$0xff]  ;;  %v212_v47 = vld [vmem:[#allocation2 + $0xf8] sm:$0xff]  ;;  %v209_v48 = vld [vmem:[#allocation2 + $0xe0] sm:$0xff] }
  0x5c   :  { %337 = vmatprep.subr.bf16.mxu0 %v194_v28  ;;  %419 = vmatprep.subr.bf16.mxu1 %v196_v29  ;;  %v211_v49 = vld [vmem:[#allocation2 + $0xf0] sm:$0xff]  ;;  %v214_v50 = vld [vmem:[#allocation2 + $0x108] sm:$0xff]  ;;  %v216_v51 = vld [vmem:[#allocation2 + $0x118] sm:$0xff] }
  0x5d   :  { %363 = vmatprep.mubr.bf16.mxu0 %v178_v43  ;;  %445 = vmatprep.mubr.bf16.mxu1 %v178_v43  ;;  %v213_v52 = vld [vmem:[#allocation2 + $0x100] sm:$0xff]  ;;  %v215_v53 = vld [vmem:[#allocation2 + $0x110] sm:$0xff]  ;;  %v218_v54 = vld [vmem:[#allocation2 + $0x128] sm:$0xff] }
  0x5e   :  { %v220_v55 = vld [vmem:[#allocation2 + $0x138] sm:$0xff]  ;;  %v217_v56 = vld [vmem:[#allocation2 + $0x120] sm:$0xff]  ;;  %v219_v57 = vld [vmem:[#allocation2 + $0x130] sm:$0xff] }
  0x5f   :  { %338 = vmatpush1.bf16.msra.mxu0 %v193_v30  ;;  %420 = vmatpush1.bf16.msra.mxu1 %v195_v31  ;;  %v222_v58 = vld [vmem:[#allocation2 + $0x148] sm:$0xff]  ;;  %v224_v59 = vld [vmem:[#allocation2 + $0x158] sm:$0xff]  ;;  %v221_v60 = vld [vmem:[#allocation2 + $0x140] sm:$0xff] }
  0x60   :  { %339 = vmatprep.subr.bf16.mxu0 %v198_v32  ;;  %421 = vmatprep.subr.bf16.mxu1 %v200_v33  ;;  %v223_v61 = vld [vmem:[#allocation2 + $0x150] sm:$0xff]  ;;  %v226_v62 = vld [vmem:[#allocation2 + $0x168] sm:$0xff]  ;;  %v228_v63 = vld [vmem:[#allocation2 + $0x178] sm:$0xff] }
  0x61   :  { %v225_v0 = vld [vmem:[#allocation2 + $0x160] sm:$0xff]  ;;  %v227_v1 = vld [vmem:[#allocation2 + $0x170] sm:$0xff]  ;;  %v230_v2 = vld [vmem:[#allocation2 + $0x188] sm:$0xff] }
  0x62   :  { %v232_v3 = vld [vmem:[#allocation2 + $0x198] sm:$0xff]  ;;  %v229_v4 = vld [vmem:[#allocation2 + $0x180] sm:$0xff]  ;;  %v231_v5 = vld [vmem:[#allocation2 + $0x190] sm:$0xff] }
  0x63   :  { %340 = vmatpush1.bf16.msra.mxu0 %v197_v34  ;;  %422 = vmatpush1.bf16.msra.mxu1 %v199_v35  ;;  %v234_v6 = vld [vmem:[#allocation2 + $0x1a8] sm:$0xff]  ;;  %v236_v7 = vld [vmem:[#allocation2 + $0x1b8] sm:$0xff]  ;;  %v233_v8 = vld [vmem:[#allocation2 + $0x1a0] sm:$0xff] }
  0x64   :  { %341 = vmatprep.subr.bf16.mxu0 %v202_v36  ;;  %423 = vmatprep.subr.bf16.mxu1 %v204_v37  ;;  %v235_v9 = vld [vmem:[#allocation2 + $0x1b0] sm:$0xff]  ;;  %v238_v10 = vld [vmem:[#allocation2 + $0x1c8] sm:$0xff]  ;;  %v240_v11 = vld [vmem:[#allocation2 + $0x1d8] sm:$0xff] }
  0x65   :  { %v237_v12 = vld [vmem:[#allocation2 + $0x1c0] sm:$0xff]  ;;  %v239_v13 = vld [vmem:[#allocation2 + $0x1d0] sm:$0xff]  ;;  %v242_v14 = vld [vmem:[#allocation2 + $0x1e8] sm:$0xff] }
  0x66   :  { %v244_v15 = vld [vmem:[#allocation2 + $0x1f8] sm:$0xff]  ;;  %v173_v16 = vld [vmem:[#allocation5] sm:$0xff]  ;;  %v243_v18 = vld [vmem:[#allocation2 + $0x1f0] sm:$0xff] }
  0x67   :  { %342 = vmatpush1.bf16.msra.mxu0 %v201_v38  ;;  %424 = vmatpush1.bf16.msra.mxu1 %v203_v39  ;;  %v241_v17 = vld [vmem:[#allocation2 + $0x1e0] sm:$0xff]  ;;  %v246_v19 = vld [vmem:[#allocation2 + $0x208] sm:$0xff]  ;;  %v248_v20 = vld [vmem:[#allocation2 + $0x218] sm:$0xff]  ;;  %v177_v21 = vpack.c.bf16 %v173_v16, %v173_v16 }
  0x68   :  { %343 = vmatprep.subr.bf16.mxu0 %v206_v40  ;;  %425 = vmatprep.subr.bf16.mxu1 %v208_v41  ;;  %v176_v22 = vld [vmem:[#allocation5 + $0x18] sm:$0xff]  ;;  %v245_v23 = vld [vmem:[#allocation2 + $0x200] sm:$0xff]  ;;  %v247_v24 = vld [vmem:[#allocation2 + $0x210] sm:$0xff] }
  0x69   :  { %v250_v25 = vld [vmem:[#allocation2 + $0x228] sm:$0xff]  ;;  %v252_v26 = vld [vmem:[#allocation2 + $0x238] sm:$0xff]  ;;  %v180_v27 = vpack.c.bf16 %v176_v22, %v176_v22  ;;  %v249_v28 = vld [vmem:[#allocation2 + $0x220] sm:$0xff] }
  0x6a   :  { %v251_v29 = vld [vmem:[#allocation2 + $0x230] sm:$0xff]  ;;  %v254_v30 = vld [vmem:[#allocation2 + $0x248] sm:$0xff]  ;;  %v256_v31 = vld [vmem:[#allocation2 + $0x258] sm:$0xff] }
  0x6b   :  { %344 = vmatpush1.bf16.msra.mxu0 %v205_v44  ;;  %426 = vmatpush1.bf16.msra.mxu1 %v207_v45  ;;  %v253_v32 = vld [vmem:[#allocation2 + $0x240] sm:$0xff]  ;;  %v255_v33 = vld [vmem:[#allocation2 + $0x250] sm:$0xff]  ;;  %v258_v34 = vld [vmem:[#allocation2 + $0x268] sm:$0xff] }
  0x6c   :  { %345 = vmatprep.subr.bf16.mxu0 %v210_v46  ;;  %427 = vmatprep.subr.bf16.mxu1 %v212_v47  ;;  %v260_v35 = vld [vmem:[#allocation2 + $0x278] sm:$0xff]  ;;  %v257_v36 = vld [vmem:[#allocation2 + $0x260] sm:$0xff]  ;;  %v259_v37 = vld [vmem:[#allocation2 + $0x270] sm:$0xff] }
  0x6d   :  { %v262_v38 = vld [vmem:[#allocation2 + $0x288] sm:$0xff]  ;;  %v264_v39 = vld [vmem:[#allocation2 + $0x298] sm:$0xff]  ;;  %v261_v40 = vld [vmem:[#allocation2 + $0x280] sm:$0xff] }
  0x6e   :  { %v263_v41 = vld [vmem:[#allocation2 + $0x290] sm:$0xff]  ;;  %v266_v42 = vld [vmem:[#allocation2 + $0x2a8] sm:$0xff]  ;;  %v268_v43 = vld [vmem:[#allocation2 + $0x2b8] sm:$0xff] }
  0x6f   :  { %346 = vmatpush1.bf16.msra.mxu0 %v209_v48  ;;  %428 = vmatpush1.bf16.msra.mxu1 %v211_v49  ;;  %v265_v44 = vld [vmem:[#allocation2 + $0x2a0] sm:$0xff]  ;;  %v267_v45 = vld [vmem:[#allocation2 + $0x2b0] sm:$0xff]  ;;  %v270_v46 = vld [vmem:[#allocation2 + $0x2c8] sm:$0xff] }
  0x70   :  { %347 = vmatprep.subr.bf16.mxu0 %v214_v50  ;;  %429 = vmatprep.subr.bf16.mxu1 %v216_v51  ;;  %v272_v47 = vld [vmem:[#allocation2 + $0x2d8] sm:$0xff]  ;;  %v269_v48 = vld [vmem:[#allocation2 + $0x2c0] sm:$0xff]  ;;  %v271_v49 = vld [vmem:[#allocation2 + $0x2d0] sm:$0xff] }
  0x71   :  { %v274_v50 = vld [vmem:[#allocation2 + $0x2e8] sm:$0xff]  ;;  %v276_v51 = vld [vmem:[#allocation2 + $0x2f8] sm:$0xff]  ;;  %v301_v16 = vld [vmem:[#allocation2 + $0x3c0] sm:$0xff] }
  0x72   :  { %v307_v22 = vld [vmem:[#allocation2 + $0x3f0] sm:$0xff] }
  0x73   :  { %348 = vmatpush1.bf16.msra.mxu0 %v213_v52  ;;  %430 = vmatpush1.bf16.msra.mxu1 %v215_v53  ;;  %v273_v52 = vld [vmem:[#allocation2 + $0x2e0] sm:$0xff]  ;;  %v275_v53 = vld [vmem:[#allocation2 + $0x2f0] sm:$0xff] }
  0x74   :  { %349 = vmatprep.subr.bf16.mxu0 %v218_v54  ;;  %431 = vmatprep.subr.bf16.mxu1 %v220_v55  ;;  %v278_v54 = vld [vmem:[#allocation2 + $0x308] sm:$0xff]  ;;  %v280_v55 = vld [vmem:[#allocation2 + $0x318] sm:$0xff] }
  0x77   :  { %350 = vmatpush1.bf16.msra.mxu0 %v217_v56  ;;  %432 = vmatpush1.bf16.msra.mxu1 %v219_v57  ;;  %v277_v56 = vld [vmem:[#allocation2 + $0x300] sm:$0xff]  ;;  %v279_v57 = vld [vmem:[#allocation2 + $0x310] sm:$0xff] }
  0x78   :  { %351 = vmatprep.subr.bf16.mxu0 %v222_v58  ;;  %433 = vmatprep.subr.bf16.mxu1 %v224_v59  ;;  %v282_v58 = vld [vmem:[#allocation2 + $0x328] sm:$0xff]  ;;  %v284_v59 = vld [vmem:[#allocation2 + $0x338] sm:$0xff] }
  0x7b   :  { %352 = vmatpush1.bf16.msra.mxu0 %v221_v60  ;;  %434 = vmatpush1.bf16.msra.mxu1 %v223_v61  ;;  %v281_v60 = vld [vmem:[#allocation2 + $0x320] sm:$0xff]  ;;  %v283_v61 = vld [vmem:[#allocation2 + $0x330] sm:$0xff] }
  0x7c   :  { %353 = vmatprep.subr.bf16.mxu0 %v226_v62  ;;  %435 = vmatprep.subr.bf16.mxu1 %v228_v63  ;;  %v286_v62 = vld [vmem:[#allocation2 + $0x348] sm:$0xff]  ;;  %v288_v63 = vld [vmem:[#allocation2 + $0x358] sm:$0xff] }
  0x7f   :  { %354 = vmatpush1.bf16.msra.mxu0 %v225_v0  ;;  %436 = vmatpush1.bf16.msra.mxu1 %v227_v1  ;;  %v285_v0 = vld [vmem:[#allocation2 + $0x340] sm:$0xff]  ;;  %v287_v1 = vld [vmem:[#allocation2 + $0x350] sm:$0xff] }
  0x80   :  { %355 = vmatprep.subr.bf16.mxu0 %v230_v2  ;;  %437 = vmatprep.subr.bf16.mxu1 %v232_v3  ;;  %v290_v2 = vld [vmem:[#allocation2 + $0x368] sm:$0xff]  ;;  %v292_v3 = vld [vmem:[#allocation2 + $0x378] sm:$0xff] }
  0x83   :  { %356 = vmatpush1.bf16.msra.mxu0 %v229_v4  ;;  %438 = vmatpush1.bf16.msra.mxu1 %v231_v5  ;;  %v289_v4 = vld [vmem:[#allocation2 + $0x360] sm:$0xff]  ;;  %v291_v5 = vld [vmem:[#allocation2 + $0x370] sm:$0xff] }
  0x84   :  { %357 = vmatprep.subr.bf16.mxu0 %v234_v6  ;;  %439 = vmatprep.subr.bf16.mxu1 %v236_v7  ;;  %v294_v6 = vld [vmem:[#allocation2 + $0x388] sm:$0xff]  ;;  %v296_v7 = vld [vmem:[#allocation2 + $0x398] sm:$0xff] }
  0x87   :  { %358 = vmatpush1.bf16.msra.mxu0 %v233_v8  ;;  %440 = vmatpush1.bf16.msra.mxu1 %v235_v9  ;;  %v293_v8 = vld [vmem:[#allocation2 + $0x380] sm:$0xff]  ;;  %v295_v9 = vld [vmem:[#allocation2 + $0x390] sm:$0xff] }
  0x88   :  { %359 = vmatprep.subr.bf16.mxu0 %v238_v10  ;;  %441 = vmatprep.subr.bf16.mxu1 %v240_v11  ;;  %v298_v10 = vld [vmem:[#allocation2 + $0x3a8] sm:$0xff]  ;;  %v300_v11 = vld [vmem:[#allocation2 + $0x3b8] sm:$0xff] }
  0x8b   :  { %360 = vmatpush1.bf16.msra.mxu0 %v237_v12  ;;  %442 = vmatpush1.bf16.msra.mxu1 %v239_v13  ;;  %v297_v12 = vld [vmem:[#allocation2 + $0x3a0] sm:$0xff]  ;;  %v299_v13 = vld [vmem:[#allocation2 + $0x3b0] sm:$0xff] }
  0x8c   :  { %361 = vmatprep.subr.bf16.mxu0 %v242_v14  ;;  %443 = vmatprep.subr.bf16.mxu1 %v244_v15  ;;  %v302_v14 = vld [vmem:[#allocation2 + $0x3c8] sm:$0xff]  ;;  %v304_v15 = vld [vmem:[#allocation2 + $0x3d8] sm:$0xff] }
  0x8f   :  { %362 = vmatpush1.bf16.msra.mxu0 %v241_v17  ;;  %444 = vmatpush1.bf16.msra.mxu1 %v243_v18  ;;  %v303_v17 = vld [vmem:[#allocation2 + $0x3d0] sm:$0xff]  ;;  %v306_v18 = vld [vmem:[#allocation2 + $0x3e8] sm:$0xff] }
  0x90   :  { %372 = vmatprep.subr.bf16.mxu0 %v246_v19  ;;  %454 = vmatprep.subr.bf16.mxu1 %v248_v20  ;;  %v308_v19 = vld [vmem:[#allocation2 + $0x3f8] sm:$0xff]  ;;  %v175_v20 = vld [vmem:[#allocation5 + $0x10] sm:$0xff] }
  0x92   :  { %364 = vmatmul.mubr.bf16.vlgmr.msra.gmra.mrb[0].mxu0 %v177_v21  ;;  %446 = vmatmul.mubr.bf16.vlgmr.msra.gmra.mrb[0].mxu1 %v177_v21  ;;  %v305_v21 = vld [vmem:[#allocation2 + $0x3e0] sm:$0xff] }
  0x93   :  { %373 = vmatpush1.bf16.msra.mxu0 %v245_v23  ;;  %455 = vmatpush1.bf16.msra.mxu1 %v247_v24  ;;  %v504_v23 = vld [vmem:[#allocation3 + $0x8] sm:$0xff]  ;;  %v506_v24 = vld [vmem:[#allocation3 + $0x18] sm:$0xff] }
  0x94   :  { %374 = vmatprep.subr.bf16.mxu0 %v250_v25  ;;  %456 = vmatprep.subr.bf16.mxu1 %v252_v26  ;;  %v179_v25 = vpack.c.bf16 %v175_v20, %v175_v20  ;;  %v503_v26 = vld [vmem:[#allocation3] sm:$0xff]  ;;  %v564_v20 = vld [vmem:[#allocation3 + $0x1e8] sm:$0xff] }
  0x95   :  { %404 = vmatprep.mubr.bf16.mxu0 %v180_v27  ;;  %486 = vmatprep.mubr.bf16.mxu1 %v180_v27  ;;  %v505_v27 = vld [vmem:[#allocation3 + $0x10] sm:$0xff] }
  0x97   :  { %375 = vmatpush1.bf16.msra.mxu0 %v249_v28  ;;  %457 = vmatpush1.bf16.msra.mxu1 %v251_v29  ;;  %v508_v28 = vld [vmem:[#allocation3 + $0x28] sm:$0xff]  ;;  %v510_v29 = vld [vmem:[#allocation3 + $0x38] sm:$0xff] }
  0x98   :  { %376 = vmatprep.subr.bf16.mxu0 %v254_v30  ;;  %458 = vmatprep.subr.bf16.mxu1 %v256_v31  ;;  %v507_v30 = vld [vmem:[#allocation3 + $0x20] sm:$0xff]  ;;  %v509_v31 = vld [vmem:[#allocation3 + $0x30] sm:$0xff] }
  0x9b   :  { %377 = vmatpush1.bf16.msra.mxu0 %v253_v32  ;;  %459 = vmatpush1.bf16.msra.mxu1 %v255_v33  ;;  %v512_v32 = vld [vmem:[#allocation3 + $0x48] sm:$0xff]  ;;  %v514_v33 = vld [vmem:[#allocation3 + $0x58] sm:$0xff] }
  0x9c   :  { %378 = vmatprep.subr.bf16.mxu0 %v258_v34  ;;  %460 = vmatprep.subr.bf16.mxu1 %v260_v35  ;;  %v511_v34 = vld [vmem:[#allocation3 + $0x40] sm:$0xff]  ;;  %v513_v35 = vld [vmem:[#allocation3 + $0x50] sm:$0xff] }
  0x9f   :  { %379 = vmatpush1.bf16.msra.mxu0 %v257_v36  ;;  %461 = vmatpush1.bf16.msra.mxu1 %v259_v37  ;;  %v516_v36 = vld [vmem:[#allocation3 + $0x68] sm:$0xff]  ;;  %v518_v37 = vld [vmem:[#allocation3 + $0x78] sm:$0xff] }
  0xa0   :  { %380 = vmatprep.subr.bf16.mxu0 %v262_v38  ;;  %462 = vmatprep.subr.bf16.mxu1 %v264_v39  ;;  %v515_v38 = vld [vmem:[#allocation3 + $0x60] sm:$0xff]  ;;  %v517_v39 = vld [vmem:[#allocation3 + $0x70] sm:$0xff] }
  0xa3   :  { %381 = vmatpush1.bf16.msra.mxu0 %v261_v40  ;;  %463 = vmatpush1.bf16.msra.mxu1 %v263_v41  ;;  %v520_v40 = vld [vmem:[#allocation3 + $0x88] sm:$0xff]  ;;  %v522_v41 = vld [vmem:[#allocation3 + $0x98] sm:$0xff] }
  0xa4   :  { %382 = vmatprep.subr.bf16.mxu0 %v266_v42  ;;  %464 = vmatprep.subr.bf16.mxu1 %v268_v43  ;;  %v519_v42 = vld [vmem:[#allocation3 + $0x80] sm:$0xff]  ;;  %v521_v43 = vld [vmem:[#allocation3 + $0x90] sm:$0xff] }
  0xa7   :  { %383 = vmatpush1.bf16.msra.mxu0 %v265_v44  ;;  %465 = vmatpush1.bf16.msra.mxu1 %v267_v45  ;;  %v524_v44 = vld [vmem:[#allocation3 + $0xa8] sm:$0xff]  ;;  %v526_v45 = vld [vmem:[#allocation3 + $0xb8] sm:$0xff] }
  0xa8   :  { %384 = vmatprep.subr.bf16.mxu0 %v270_v46  ;;  %466 = vmatprep.subr.bf16.mxu1 %v272_v47  ;;  %v523_v46 = vld [vmem:[#allocation3 + $0xa0] sm:$0xff]  ;;  %v525_v47 = vld [vmem:[#allocation3 + $0xb0] sm:$0xff] }
  0xab   :  { %385 = vmatpush1.bf16.msra.mxu0 %v269_v48  ;;  %467 = vmatpush1.bf16.msra.mxu1 %v271_v49  ;;  %v528_v48 = vld [vmem:[#allocation3 + $0xc8] sm:$0xff]  ;;  %v530_v49 = vld [vmem:[#allocation3 + $0xd8] sm:$0xff] }
  0xac   :  { %386 = vmatprep.subr.bf16.mxu0 %v274_v50  ;;  %468 = vmatprep.subr.bf16.mxu1 %v276_v51  ;;  %v527_v50 = vld [vmem:[#allocation3 + $0xc0] sm:$0xff]  ;;  %v529_v51 = vld [vmem:[#allocation3 + $0xd0] sm:$0xff] }
  0xaf   :  { %387 = vmatpush1.bf16.msra.mxu0 %v273_v52  ;;  %469 = vmatpush1.bf16.msra.mxu1 %v275_v53  ;;  %v532_v52 = vld [vmem:[#allocation3 + $0xe8] sm:$0xff]  ;;  %v534_v53 = vld [vmem:[#allocation3 + $0xf8] sm:$0xff] }
  0xb0   :  { %388 = vmatprep.subr.bf16.mxu0 %v278_v54  ;;  %470 = vmatprep.subr.bf16.mxu1 %v280_v55  ;;  %v531_v54 = vld [vmem:[#allocation3 + $0xe0] sm:$0xff]  ;;  %v533_v55 = vld [vmem:[#allocation3 + $0xf0] sm:$0xff] }
  0xb3   :  { %389 = vmatpush1.bf16.msra.mxu0 %v277_v56  ;;  %471 = vmatpush1.bf16.msra.mxu1 %v279_v57  ;;  %v536_v56 = vld [vmem:[#allocation3 + $0x108] sm:$0xff]  ;;  %v538_v57 = vld [vmem:[#allocation3 + $0x118] sm:$0xff] }
  0xb4   :  { %390 = vmatprep.subr.bf16.mxu0 %v282_v58  ;;  %472 = vmatprep.subr.bf16.mxu1 %v284_v59  ;;  %v535_v58 = vld [vmem:[#allocation3 + $0x100] sm:$0xff]  ;;  %v537_v59 = vld [vmem:[#allocation3 + $0x110] sm:$0xff] }
  0xb7   :  { %391 = vmatpush1.bf16.msra.mxu0 %v281_v60  ;;  %473 = vmatpush1.bf16.msra.mxu1 %v283_v61  ;;  %v540_v60 = vld [vmem:[#allocation3 + $0x128] sm:$0xff]  ;;  %v542_v61 = vld [vmem:[#allocation3 + $0x138] sm:$0xff] }
  0xb8   :  { %392 = vmatprep.subr.bf16.mxu0 %v286_v62  ;;  %474 = vmatprep.subr.bf16.mxu1 %v288_v63  ;;  %v539_v62 = vld [vmem:[#allocation3 + $0x120] sm:$0xff]  ;;  %v541_v63 = vld [vmem:[#allocation3 + $0x130] sm:$0xff] }
  0xbb   :  { %393 = vmatpush1.bf16.msra.mxu0 %v285_v0  ;;  %475 = vmatpush1.bf16.msra.mxu1 %v287_v1  ;;  %v544_v0 = vld [vmem:[#allocation3 + $0x148] sm:$0xff]  ;;  %v546_v1 = vld [vmem:[#allocation3 + $0x158] sm:$0xff] }
  0xbc   :  { %394 = vmatprep.subr.bf16.mxu0 %v290_v2  ;;  %476 = vmatprep.subr.bf16.mxu1 %v292_v3  ;;  %v543_v2 = vld [vmem:[#allocation3 + $0x140] sm:$0xff]  ;;  %v545_v3 = vld [vmem:[#allocation3 + $0x150] sm:$0xff] }
  0xbf   :  { %395 = vmatpush1.bf16.msra.mxu0 %v289_v4  ;;  %477 = vmatpush1.bf16.msra.mxu1 %v291_v5  ;;  %v548_v4 = vld [vmem:[#allocation3 + $0x168] sm:$0xff]  ;;  %v550_v5 = vld [vmem:[#allocation3 + $0x178] sm:$0xff] }
  0xc0   :  { %396 = vmatprep.subr.bf16.mxu0 %v294_v6  ;;  %478 = vmatprep.subr.bf16.mxu1 %v296_v7  ;;  %v547_v6 = vld [vmem:[#allocation3 + $0x160] sm:$0xff]  ;;  %v549_v7 = vld [vmem:[#allocation3 + $0x170] sm:$0xff] }
  0xc3   :  { %397 = vmatpush1.bf16.msra.mxu0 %v293_v8  ;;  %479 = vmatpush1.bf16.msra.mxu1 %v295_v9  ;;  %v552_v8 = vld [vmem:[#allocation3 + $0x188] sm:$0xff]  ;;  %v554_v9 = vld [vmem:[#allocation3 + $0x198] sm:$0xff] }
  0xc4   :  { %398 = vmatprep.subr.bf16.mxu0 %v298_v10  ;;  %480 = vmatprep.subr.bf16.mxu1 %v300_v11  ;;  %v551_v10 = vld [vmem:[#allocation3 + $0x180] sm:$0xff]  ;;  %v553_v11 = vld [vmem:[#allocation3 + $0x190] sm:$0xff] }
  0xc7   :  { %399 = vmatpush1.bf16.msra.mxu0 %v297_v12  ;;  %481 = vmatpush1.bf16.msra.mxu1 %v299_v13  ;;  %v556_v12 = vld [vmem:[#allocation3 + $0x1a8] sm:$0xff]  ;;  %v558_v13 = vld [vmem:[#allocation3 + $0x1b8] sm:$0xff] }
  0xc8   :  { %400 = vmatprep.subr.bf16.mxu0 %v302_v14  ;;  %482 = vmatprep.subr.bf16.mxu1 %v304_v15  ;;  %v555_v14 = vld [vmem:[#allocation3 + $0x1a0] sm:$0xff]  ;;  %v557_v15 = vld [vmem:[#allocation3 + $0x1b0] sm:$0xff] }
  0xcb   :  { %401 = vmatpush1.bf16.msra.mxu0 %v301_v16  ;;  %483 = vmatpush1.bf16.msra.mxu1 %v303_v17  ;;  %v560_v16 = vld [vmem:[#allocation3 + $0x1c8] sm:$0xff]  ;;  %v562_v17 = vld [vmem:[#allocation3 + $0x1d8] sm:$0xff] }
  0xcc   :  { %402 = vmatprep.subr.bf16.mxu0 %v306_v18  ;;  %484 = vmatprep.subr.bf16.mxu1 %v308_v19  ;;  %v559_v18 = vld [vmem:[#allocation3 + $0x1c0] sm:$0xff]  ;;  %v561_v19 = vld [vmem:[#allocation3 + $0x1d0] sm:$0xff] }
  0xcf   :  { %403 = vmatpush1.bf16.msra.mxu0 %v305_v21  ;;  %485 = vmatpush1.bf16.msra.mxu1 %v307_v22  ;;  %v566_v21 = vld [vmem:[#allocation3 + $0x1f8] sm:$0xff]  ;;  %v563_v22 = vld [vmem:[#allocation3 + $0x1e0] sm:$0xff] }
  0xd0   :  { %653 = vmatprep.subr.bf16.mxu0 %v504_v23  ;;  %735 = vmatprep.subr.bf16.mxu1 %v506_v24  ;;  %v565_v23 = vld [vmem:[#allocation3 + $0x1f0] sm:$0xff]  ;;  %v568_v24 = vld [vmem:[#allocation3 + $0x208] sm:$0xff] }
  0xd2   :  { %405 = vmatmul.mubr.bf16.vlgmr.msra.gmra.mrb[0].mxu0 %v179_v25  ;;  %487 = vmatmul.mubr.bf16.vlgmr.msra.gmra.mrb[0].mxu1 %v179_v25  ;;  %v570_v25 = vld [vmem:[#allocation3 + $0x218] sm:$0xff] }
  0xd3   :  { %654 = vmatpush1.bf16.msra.mxu0 %v503_v26  ;;  %736 = vmatpush1.bf16.msra.mxu1 %v505_v27  ;;  %v311_v26 = vlaneseq }
  0xd4   :  { %655 = vmatprep.subr.bf16.mxu0 %v508_v28  ;;  %737 = vmatprep.subr.bf16.mxu1 %v510_v29  ;;  %v1120_v29 = vld [vmem:[%s1176_s2] sm:$0xf]  ;;  %s1028_s2 = smov [#allocation11]  }
  0xd5   :  { %v1114_v27 = vshrl.u32 %v311_v26, 7  ;;  %v608_v26 = vld [vmem:[#allocation3 + $0x348] sm:$0xff]  ;;  %s836_s22 = sshll.u32 %s1028_s2, 4  ;;  %s837_s22 = int_to_ptr.vmem [resolvable:$true] %s836_s22 }
  0xd6   :  { %s957_s24 = scalar_lea.vmem %s837_s22, 4096  ;;  %p962_p3 = scmp.lt.s32.totalorder %s837_s22, %s837_s22 }
  0xd7   :  { %656 = vmatpush1.bf16.msra.mxu0 %v507_v30  ;;  %738 = vmatpush1.bf16.msra.mxu1 %v509_v31  ;;  %v313_v28 = vsub.s32 0, %v1114_v27  ;;  %v317_v30 = vsub.s32 1, %v1114_v27  ;;  %v325_v31 = vsub.s32 3, %v1114_v27  ;;  %p958_p2 = scmp.ne.s32.totalorder %s837_s22, %s957_s24  ;;  %p963_p4 = scmp.lt.s32.totalorder %s957_s24, %s957_s24 }
  0xd8   :  { %657 = vmatprep.subr.bf16.mxu0 %v512_v32  ;;  %739 = vmatprep.subr.bf16.mxu1 %v514_v33 }
  0xd9   :  { %v314_v32 = vrot.slane %v1120_v29, %v313_v28  ;;  %v318_v33 = vrot.slane %v1120_v29, %v317_v30  ;;  %p964_p5 = por %p963_p4, %p962_p3 }
  0xdb   :  { %658 = vmatpush1.bf16.msra.mxu0 %v511_v34  ;;  %740 = vmatpush1.bf16.msra.mxu1 %v513_v35  ;;  %v326_v34 = vrot.slane %v1120_v29, %v325_v31  ;;  %p965_p6 = pnand %p964_p5, %p958_p2 }
  0xdc   :  { %659 = vmatprep.subr.bf16.mxu0 %v516_v36  ;;  %741 = vmatprep.subr.bf16.mxu1 %v518_v37 }
  0xdf   :  { %660 = vmatpush1.bf16.msra.mxu0 %v515_v38  ;;  %742 = vmatpush1.bf16.msra.mxu1 %v517_v39 }
  0xe0   :  { %661 = vmatprep.subr.bf16.mxu0 %v520_v40  ;;  %743 = vmatprep.subr.bf16.mxu1 %v522_v41 }
  0xe3   :  { %662 = vmatpush1.bf16.msra.mxu0 %v519_v42  ;;  %744 = vmatpush1.bf16.msra.mxu1 %v521_v43 }
  0xe4   :  { %663 = vmatprep.subr.bf16.mxu0 %v524_v44  ;;  %745 = vmatprep.subr.bf16.mxu1 %v526_v45 }
  0xe7   :  { %664 = vmatpush1.bf16.msra.mxu0 %v523_v46  ;;  %746 = vmatpush1.bf16.msra.mxu1 %v525_v47 }
  0xe8   :  { %665 = vmatprep.subr.bf16.mxu0 %v528_v48  ;;  %747 = vmatprep.subr.bf16.mxu1 %v530_v49 }
  0xeb   :  { %666 = vmatpush1.bf16.msra.mxu0 %v527_v50  ;;  %748 = vmatpush1.bf16.msra.mxu1 %v529_v51  ;;  %v567_v51 = vld [vmem:[#allocation3 + $0x200] sm:$0xff] }
  0xec   :  { %667 = vmatprep.subr.bf16.mxu0 %v532_v52  ;;  %749 = vmatprep.subr.bf16.mxu1 %v534_v53  ;;  %v569_v52 = vld [vmem:[#allocation3 + $0x210] sm:$0xff] }
  0xef   :  { %668 = vmatpush1.bf16.msra.mxu0 %v531_v54  ;;  %750 = vmatpush1.bf16.msra.mxu1 %v533_v55  ;;  %v572_v54 = vld [vmem:[#allocation3 + $0x228] sm:$0xff]  ;;  %v574_v55 = vld [vmem:[#allocation3 + $0x238] sm:$0xff] }
  0xf0   :  { %669 = vmatprep.subr.bf16.mxu0 %v536_v56  ;;  %751 = vmatprep.subr.bf16.mxu1 %v538_v57  ;;  %v571_v56 = vld [vmem:[#allocation3 + $0x220] sm:$0xff]  ;;  %v573_v57 = vld [vmem:[#allocation3 + $0x230] sm:$0xff] }
  0xf3   :  { %670 = vmatpush1.bf16.msra.mxu0 %v535_v58  ;;  %752 = vmatpush1.bf16.msra.mxu1 %v537_v59  ;;  %v576_v58 = vld [vmem:[#allocation3 + $0x248] sm:$0xff]  ;;  %v578_v59 = vld [vmem:[#allocation3 + $0x258] sm:$0xff] }
  0xf4   :  { %671 = vmatprep.subr.bf16.mxu0 %v540_v60  ;;  %753 = vmatprep.subr.bf16.mxu1 %v542_v61  ;;  %v575_v60 = vld [vmem:[#allocation3 + $0x240] sm:$0xff]  ;;  %v577_v61 = vld [vmem:[#allocation3 + $0x250] sm:$0xff] }
  0xf7   :  { %672 = vmatpush1.bf16.msra.mxu0 %v539_v62  ;;  %754 = vmatpush1.bf16.msra.mxu1 %v541_v63  ;;  %v580_v62 = vld [vmem:[#allocation3 + $0x268] sm:$0xff]  ;;  %v582_v63 = vld [vmem:[#allocation3 + $0x278] sm:$0xff] }
  0xf8   :  { %673 = vmatprep.subr.bf16.mxu0 %v544_v0  ;;  %755 = vmatprep.subr.bf16.mxu1 %v546_v1  ;;  %v579_v0 = vld [vmem:[#allocation3 + $0x260] sm:$0xff]  ;;  %v581_v1 = vld [vmem:[#allocation3 + $0x270] sm:$0xff] }
  0xfb   :  { %674 = vmatpush1.bf16.msra.mxu0 %v543_v2  ;;  %756 = vmatpush1.bf16.msra.mxu1 %v545_v3  ;;  %v584_v2 = vld [vmem:[#allocation3 + $0x288] sm:$0xff]  ;;  %v586_v3 = vld [vmem:[#allocation3 + $0x298] sm:$0xff] }
  0xfc   :  { %675 = vmatprep.subr.bf16.mxu0 %v548_v4  ;;  %757 = vmatprep.subr.bf16.mxu1 %v550_v5  ;;  %v583_v4 = vld [vmem:[#allocation3 + $0x280] sm:$0xff]  ;;  %v585_v5 = vld [vmem:[#allocation3 + $0x290] sm:$0xff] }
  0xff   :  { %676 = vmatpush1.bf16.msra.mxu0 %v547_v6  ;;  %758 = vmatpush1.bf16.msra.mxu1 %v549_v7  ;;  %v588_v6 = vld [vmem:[#allocation3 + $0x2a8] sm:$0xff]  ;;  %v590_v7 = vld [vmem:[#allocation3 + $0x2b8] sm:$0xff] }
 0x100   :  { %677 = vmatprep.subr.bf16.mxu0 %v552_v8  ;;  %759 = vmatprep.subr.bf16.mxu1 %v554_v9  ;;  %v587_v8 = vld [vmem:[#allocation3 + $0x2a0] sm:$0xff]  ;;  %v589_v9 = vld [vmem:[#allocation3 + $0x2b0] sm:$0xff] }
 0x103   :  { %678 = vmatpush1.bf16.msra.mxu0 %v551_v10  ;;  %760 = vmatpush1.bf16.msra.mxu1 %v553_v11  ;;  %v592_v10 = vld [vmem:[#allocation3 + $0x2c8] sm:$0xff]  ;;  %v594_v11 = vld [vmem:[#allocation3 + $0x2d8] sm:$0xff] }
 0x104   :  { %679 = vmatprep.subr.bf16.mxu0 %v556_v12  ;;  %761 = vmatprep.subr.bf16.mxu1 %v558_v13  ;;  %v591_v12 = vld [vmem:[#allocation3 + $0x2c0] sm:$0xff]  ;;  %v593_v13 = vld [vmem:[#allocation3 + $0x2d0] sm:$0xff] }
 0x107   :  { %680 = vmatpush1.bf16.msra.mxu0 %v555_v14  ;;  %762 = vmatpush1.bf16.msra.mxu1 %v557_v15  ;;  %v596_v14 = vld [vmem:[#allocation3 + $0x2e8] sm:$0xff]  ;;  %v598_v15 = vld [vmem:[#allocation3 + $0x2f8] sm:$0xff] }
 0x108   :  { %681 = vmatprep.subr.bf16.mxu0 %v560_v16  ;;  %763 = vmatprep.subr.bf16.mxu1 %v562_v17  ;;  %v595_v16 = vld [vmem:[#allocation3 + $0x2e0] sm:$0xff]  ;;  %v597_v17 = vld [vmem:[#allocation3 + $0x2f0] sm:$0xff] }
 0x10b   :  { %682 = vmatpush1.bf16.msra.mxu0 %v559_v18  ;;  %764 = vmatpush1.bf16.msra.mxu1 %v561_v19  ;;  %v600_v18 = vld [vmem:[#allocation3 + $0x308] sm:$0xff]  ;;  %v602_v19 = vld [vmem:[#allocation3 + $0x318] sm:$0xff] }
 0x10c   :  { %683 = vmatprep.subr.bf16.mxu0 %v564_v20  ;;  %765 = vmatprep.subr.bf16.mxu1 %v566_v21  ;;  %v599_v20 = vld [vmem:[#allocation3 + $0x300] sm:$0xff]  ;;  %v601_v21 = vld [vmem:[#allocation3 + $0x310] sm:$0xff] }
 0x10f   :  { %684 = vmatpush1.bf16.msra.mxu0 %v563_v22  ;;  %766 = vmatpush1.bf16.msra.mxu1 %v565_v23  ;;  %v604_v22 = vld [vmem:[#allocation3 + $0x328] sm:$0xff]  ;;  %v606_v23 = vld [vmem:[#allocation3 + $0x338] sm:$0xff] }
 0x110   :  { %694 = vmatprep.subr.bf16.mxu0 %v568_v24  ;;  %776 = vmatprep.subr.bf16.mxu1 %v570_v25  ;;  %v603_v24 = vld [vmem:[#allocation3 + $0x320] sm:$0xff]  ;;  %v605_v25 = vld [vmem:[#allocation3 + $0x330] sm:$0xff] }
 0x1a5   :  { %v406_v35 = vpop.f32.mrb[0].mxu0  ;;  %v1133_v36 = vpop.f32.mrb[0].mxu1 }
 0x1a6   :  { %v872_v37 = vadd.f32 %v406_v35, %v314_v32  ;;  %v408_v38 = vpop.f32.mrb[1].mxu0  ;;  %v490_v39 = vpop.f32.mrb[1].mxu1  ;;  %v610_v32 = vld [vmem:[#allocation3 + $0x358] sm:$0xff]  ;;  %v612_v35 = vld [vmem:[#allocation3 + $0x368] sm:$0xff] }
 0x1a7   :  { %v873_v40 = vadd.f32 %v408_v38, %v318_v33  ;;  %v875_v41 = vadd.f32 %v490_v39, %v326_v34  ;;  %v410_v42 = vpop.f32.mrb[2].mxu0  ;;  %v492_v43 = vpop.f32.mrb[2].mxu1  ;;  %v607_v33 = vld [vmem:[#allocation3 + $0x340] sm:$0xff]  ;;  %v609_v34 = vld [vmem:[#allocation3 + $0x350] sm:$0xff] }
 0x1a8   :  { %v495_v44 = vmax.f32 %v872_v37, 0.0  ;;  %v411_v45 = vpop.f32.mrb[3].mxu0  ;;  %v493_v46 = vpop.f32.mrb[3].mxu1  ;;  %v614_v37 = vld [vmem:[#allocation3 + $0x378] sm:$0xff]  ;;  %v611_v38 = vld [vmem:[#allocation3 + $0x360] sm:$0xff]  ;;  %v613_v39 = vld [vmem:[#allocation3 + $0x370] sm:$0xff] }
 0x1a9   :  { %v496_v47 = vmax.f32 %v873_v40, 0.0  ;;  %v498_v48 = vmax.f32 %v875_v41, 0.0  ;;  %v616_v40 = vld [vmem:[#allocation3 + $0x388] sm:$0xff]  ;;  %v618_v41 = vld [vmem:[#allocation3 + $0x398] sm:$0xff]  ;;  %v321_v42 = vsub.s32 2, %v1114_v27  ;;  %v615_v43 = vld [vmem:[#allocation3 + $0x380] sm:$0xff] }
 0x1aa   :  { %v499_v50 = vpack.c.bf16 %v495_v44, %v495_v44  ;;  %v617_v44 = vld [vmem:[#allocation3 + $0x390] sm:$0xff]  ;;  %v620_v45 = vld [vmem:[#allocation3 + $0x3a8] sm:$0xff]  ;;  %v622_v46 = vld [vmem:[#allocation3 + $0x3b8] sm:$0xff] }
 0x1ab   :  { %v500_v49 = vpack.c.bf16 %v496_v47, %v496_v47  ;;  %v502_v53 = vpack.c.bf16 %v498_v48, %v498_v48  ;;  %v322_v47 = vrot.slane %v1120_v29, %v321_v42  ;;  %v619_v48 = vld [vmem:[#allocation3 + $0x3a0] sm:$0xff] }
 0x1ac   :  { %v627_v29 = vld [vmem:[#allocation3 + $0x3e0] sm:$0xff] }
 0x1ad   :  { %685 = vmatprep.mubr.bf16.mxu0 %v500_v49  ;;  %767 = vmatprep.mubr.bf16.mxu1 %v500_v49  ;;  %v621_v49 = vld [vmem:[#allocation3 + $0x3b0] sm:$0xff] }
 0x1ae   :  { %686 = vmatmul.mubr.bf16.vlgmr.msra.gmra.mrb[4].mxu0 %v499_v50  ;;  %768 = vmatmul.mubr.bf16.vlgmr.msra.gmra.mrb[4].mxu1 %v499_v50  ;;  %v624_v50 = vld [vmem:[#allocation3 + $0x3c8] sm:$0xff] }
 0x1af   :  { %695 = vmatpush1.bf16.msra.mxu0 %v567_v51  ;;  %777 = vmatpush1.bf16.msra.mxu1 %v569_v52  ;;  %v626_v51 = vld [vmem:[#allocation3 + $0x3d8] sm:$0xff]  ;;  %v874_v52 = vadd.f32 %v1133_v36, %v322_v47 }
 0x1b0   :  { %726 = vmatprep.mubr.bf16.mxu0 %v502_v53  ;;  %808 = vmatprep.mubr.bf16.mxu1 %v502_v53  ;;  %v623_v53 = vld [vmem:[#allocation3 + $0x3c0] sm:$0xff] }
 0x1b1   :  { %696 = vmatprep.subr.bf16.mxu0 %v572_v54  ;;  %778 = vmatprep.subr.bf16.mxu1 %v574_v55  ;;  %v625_v54 = vld [vmem:[#allocation3 + $0x3d0] sm:$0xff]  ;;  %v628_v55 = vld [vmem:[#allocation3 + $0x3e8] sm:$0xff] }
 0x1b3   :  { %697 = vmatpush1.bf16.msra.mxu0 %v571_v56  ;;  %779 = vmatpush1.bf16.msra.mxu1 %v573_v57  ;;  %v630_v56 = vld [vmem:[#allocation3 + $0x3f8] sm:$0xff]  ;;  %v497_v57 = vmax.f32 %v874_v52, 0.0 }
 0x1b4   :  { %698 = vmatprep.subr.bf16.mxu0 %v576_v58  ;;  %780 = vmatprep.subr.bf16.mxu1 %v578_v59  ;;  %v629_v58 = vld [vmem:[#allocation3 + $0x3f0] sm:$0xff] }
 0x1b5   :  { %v501_v59 = vpack.c.bf16 %v497_v57, %v497_v57 }
 0x1b7   :  { %699 = vmatpush1.bf16.msra.mxu0 %v575_v60  ;;  %781 = vmatpush1.bf16.msra.mxu1 %v577_v61 }
 0x1b8   :  { %700 = vmatprep.subr.bf16.mxu0 %v580_v62  ;;  %782 = vmatprep.subr.bf16.mxu1 %v582_v63 }
 0x1bb   :  { %701 = vmatpush1.bf16.msra.mxu0 %v579_v0  ;;  %783 = vmatpush1.bf16.msra.mxu1 %v581_v1 }
 0x1bc   :  { %702 = vmatprep.subr.bf16.mxu0 %v584_v2  ;;  %784 = vmatprep.subr.bf16.mxu1 %v586_v3 }
 0x1bf   :  { %703 = vmatpush1.bf16.msra.mxu0 %v583_v4  ;;  %785 = vmatpush1.bf16.msra.mxu1 %v585_v5 }
 0x1c0   :  { %704 = vmatprep.subr.bf16.mxu0 %v588_v6  ;;  %786 = vmatprep.subr.bf16.mxu1 %v590_v7 }
 0x1c3   :  { %705 = vmatpush1.bf16.msra.mxu0 %v587_v8  ;;  %787 = vmatpush1.bf16.msra.mxu1 %v589_v9 }
 0x1c4   :  { %706 = vmatprep.subr.bf16.mxu0 %v592_v10  ;;  %788 = vmatprep.subr.bf16.mxu1 %v594_v11 }
 0x1c7   :  { %707 = vmatpush1.bf16.msra.mxu0 %v591_v12  ;;  %789 = vmatpush1.bf16.msra.mxu1 %v593_v13 }
 0x1c8   :  { %708 = vmatprep.subr.bf16.mxu0 %v596_v14  ;;  %790 = vmatprep.subr.bf16.mxu1 %v598_v15 }
 0x1cb   :  { %709 = vmatpush1.bf16.msra.mxu0 %v595_v16  ;;  %791 = vmatpush1.bf16.msra.mxu1 %v597_v17 }
 0x1cc   :  { %710 = vmatprep.subr.bf16.mxu0 %v600_v18  ;;  %792 = vmatprep.subr.bf16.mxu1 %v602_v19 }
 0x1cf   :  { %711 = vmatpush1.bf16.msra.mxu0 %v599_v20  ;;  %793 = vmatpush1.bf16.msra.mxu1 %v601_v21 }
 0x1d0   :  { %712 = vmatprep.subr.bf16.mxu0 %v604_v22  ;;  %794 = vmatprep.subr.bf16.mxu1 %v606_v23 }
 0x1d3   :  { %713 = vmatpush1.bf16.msra.mxu0 %v603_v24  ;;  %795 = vmatpush1.bf16.msra.mxu1 %v605_v25 }
 0x1d4   :  { %714 = vmatprep.subr.bf16.mxu0 %v608_v26  ;;  %796 = vmatprep.subr.bf16.mxu1 %v610_v32 }
 0x1d7   :  { %715 = vmatpush1.bf16.msra.mxu0 %v607_v33  ;;  %797 = vmatpush1.bf16.msra.mxu1 %v609_v34 }
 0x1d8   :  { %716 = vmatprep.subr.bf16.mxu0 %v612_v35  ;;  %798 = vmatprep.subr.bf16.mxu1 %v614_v37 }
 0x1db   :  { %717 = vmatpush1.bf16.msra.mxu0 %v611_v38  ;;  %799 = vmatpush1.bf16.msra.mxu1 %v613_v39 }
 0x1dc   :  { %718 = vmatprep.subr.bf16.mxu0 %v616_v40  ;;  %800 = vmatprep.subr.bf16.mxu1 %v618_v41 }
 0x1df   :  { %719 = vmatpush1.bf16.msra.mxu0 %v615_v43  ;;  %801 = vmatpush1.bf16.msra.mxu1 %v617_v44 }
 0x1e0   :  { %720 = vmatprep.subr.bf16.mxu0 %v620_v45  ;;  %802 = vmatprep.subr.bf16.mxu1 %v622_v46 }
 0x1e3   :  { %721 = vmatpush1.bf16.msra.mxu0 %v619_v48  ;;  %803 = vmatpush1.bf16.msra.mxu1 %v621_v49 }
 0x1e4   :  { %722 = vmatprep.subr.bf16.mxu0 %v624_v50  ;;  %804 = vmatprep.subr.bf16.mxu1 %v626_v51 }
 0x1e7   :  { %723 = vmatpush1.bf16.msra.mxu0 %v623_v53  ;;  %805 = vmatpush1.bf16.msra.mxu1 %v625_v54 }
 0x1e8   :  { %724 = vmatprep.subr.bf16.mxu0 %v628_v55  ;;  %806 = vmatprep.subr.bf16.mxu1 %v630_v56 }
 0x1eb   :  { %725 = vmatpush1.bf16.msra.mxu0 %v627_v29  ;;  %807 = vmatpush1.bf16.msra.mxu1 %v629_v58 }
 0x1ee   :  { %727 = vmatmul.mubr.bf16.vlgmr.msra.gmra.mrb[4].mxu0 %v501_v59  ;;  %809 = vmatmul.mubr.bf16.vlgmr.msra.gmra.mrb[4].mxu1 %v501_v59 }
 0x1ef   :  { %968 = shalt.err (!%p965_p6)
}
 0x1f0   :  { %s969_s28 = scalar_lea.hbm %s1181_s7, 4096 }
 0x1f1   :  { %p970_p7 = scmp.ne.s32.totalorder %s1181_s7, %s969_s28  ;;  %p973_p8 = scmp.lt.u32.totalorder %s969_s28, %s1181_s7 }
 0x1f3   :  { %p975_p9 = pnand %p973_p8, %p970_p7 }
 0x1f5   :  { %978 = shalt.err (!%p975_p9)
}
 0x1f6   :  { %842 = dma.vmem_to_hbm [thread:$0]  %s837_s22, 4096, %s1181_s7, [#allocation12], %s1015_s0, %s1015_s0, %s1016_s23  }
 0x1f7   :  { %v631_v36 = vld [vmem:[%s1178_s4] sm:$0xf]  ;;  %s1029_s12 = smov [#allocation10]  }
 0x1f8   :  { %v636_v60 = vrot.slane %v631_v36, %v313_v28  ;;  %v644_v61 = vrot.slane %v631_v36, %v321_v42  ;;  %v640_v62 = vrot.slane %v631_v36, %v317_v30  ;;  %v648_v63 = vrot.slane %v631_v36, %v325_v31  ;;  %s827_s13 = sshll.u32 %s1029_s12, 4  ;;  %s828_s13 = int_to_ptr.vmem [resolvable:$true] %s827_s13 }
 0x1f9   :  { %s979_s4 = scalar_lea.vmem %s828_s13, 512  ;;  %p984_p11 = scmp.lt.s32.totalorder %s828_s13, %s828_s13 }
 0x1fa   :  { %p980_p10 = scmp.ne.s32.totalorder %s828_s13, %s979_s4  ;;  %p985_p12 = scmp.lt.s32.totalorder %s979_s4, %s979_s4 }
 0x1fc   :  { %p986_p13 = por %p985_p12, %p984_p11 }
 0x1fe   :  { %p987_p0 = pnand %p986_p13, %p980_p10 }
 0x2c1   :  { %v728_v0 = vpop.f32.mrb[4].mxu0  ;;  %v810_v1 = vpop.f32.mrb[4].mxu1 }
 0x2c2   :  { %v876_v2 = vadd.f32 %v728_v0, %v636_v60  ;;  %v878_v3 = vadd.f32 %v810_v1, %v644_v61  ;;  %v730_v4 = vpop.f32.mrb[5].mxu0  ;;  %v812_v5 = vpop.f32.mrb[5].mxu1 }
 0x2c3   :  { %v877_v6 = vadd.f32 %v730_v4, %v640_v62  ;;  %v879_v7 = vadd.f32 %v812_v5, %v648_v63  ;;  %v732_v8 = vpop.f32.mrb[6].mxu0  ;;  %v814_v9 = vpop.f32.mrb[6].mxu1 }
 0x2c4   :  { %817 = vst [vmem:[#allocation10] sm:$0xff] %v876_v2  ;;  %819 = vst [vmem:[#allocation10 + $0x10] sm:$0xff] %v878_v3  ;;  %v733_v28 = vpop.f32.mrb[7].mxu0  ;;  %v815_v30 = vpop.f32.mrb[7].mxu1 }
 0x2c5   :  { %818 = vst [vmem:[#allocation10 + $0x8] sm:$0xff] %v877_v6  ;;  %820 = vst [vmem:[#allocation10 + $0x18] sm:$0xff] %v879_v7 }
 0x2c6   :  { %990 = shalt.err (!%p987_p0)
}
 0x2c7   :  { %s991_s23 = scalar_lea.hbm %s1180_s6, 512 }
 0x2c8   :  { %p992_p1 = scmp.ne.s32.totalorder %s1180_s6, %s991_s23  ;;  %p995_p2 = scmp.lt.u32.totalorder %s991_s23, %s1180_s6 }
 0x2ca   :  { %p997_p3 = pnand %p995_p2, %p992_p1 }
 0x2cc   :  { %1000 = shalt.err (!%p997_p3)
}
 0x2cd   :  { %830 = dma.vmem_to_hbm [thread:$0]  %s828_s13, 512, %s1180_s6, [#allocation7]  }
 0x2ce   :  { %1009 = dma.done.wait [#allocation7], 512  }
 0x2cf   :  { %1010 = vsyncadd [#allocation7], 4294966784 }
 0x2d0   :  { %1011 = dma.done.wait [#allocation12], 4096  }
 0x2d1   :  { %1012 = vsyncadd [#allocation12], 4294963200 }
 0x2d2   :  { %849 = vsyncpa [#allocation6], 1 }
 0x2d3   :  { %850 = vsyncpa [#allocation9], 1 }
 0x2d4   :  { %851 = vsyncpa [#allocation7], 1 }
 0x2d5   :  { %852 = vsyncpa [#allocation12], 1 }
 0x2d6   :  { %853 = vsyncmov [#allocation4] }
 0x2d9   :  { %s854_s20 = vpop.sfrf %853 }
 0x2da   :  { %p870_p4 = scmp.ne.s32.totalorder %s854_s20, 0 }
 0x2dc   :  { %858 = shalt.err (%p870_p4)  }
 0x2dd   :  { %860 = vsyncmov [#allocation4 + $0x1] }
 0x2e0   :  { %s861_s21 = vpop.sfrf %860 }
 0x2e1   :  { %p871_p5 = scmp.ne.s32.totalorder %s861_s21, 0 }
 0x2e3   :  { %865 = shalt.err (%p871_p5)  }

</bundles_post_ra>
